<compile_context>
chip_gen: v5e
topology: v5e:2x2
jax: 0.10.0
libtpu: 0.0.40
codegen_flags: <defaults>
</compile_context>

<pallas_src>
import functools

import jax
import jax.numpy as jnp
from jax import lax
from jax.experimental import pallas as pl
from jax.experimental.pallas import tpu as pltpu


def _lstm_classifier_kernel(x_ref, wih_ref, whh_ref, b_ref, out_ref, *,
                            hidden, seq_len, use_sigmoid):
    H = hidden
    T = seq_len

    # Input projection for all timesteps at once on the MXU (off the recurrent
    # critical path): (T, E) @ (E, 4H) + b -> (T, 4H), kept as a value.
    xp = (jnp.dot(x_ref[...], wih_ref[...], preferred_element_type=jnp.float32)
          + b_ref[...])

    whh = whh_ref[...]                                  # (H, 4H) = W_hh^T

    # Constant identity used to move h from lane layout (1,H) into sublane
    # layout (H,1) using only broadcast / multiply / reduce (no MXU, no
    # explicit transpose op).  Built once, outside the unrolled loop.
    eye = (lax.broadcasted_iota(jnp.int32, (H, H), 0)
           == lax.broadcasted_iota(jnp.int32, (H, H), 1)).astype(jnp.float32)

    def gate_nonlin(gates):
        # One full-width sigmoid EUP push + one tanh push on the g block only.
        sig = jax.nn.sigmoid(gates)                     # (1, 4H)
        g = jnp.tanh(gates[:, 2 * H:3 * H])             # (1, H)
        return sig[:, 0:H], sig[:, H:2 * H], g, sig[:, 3 * H:4 * H]

    def write_out(t, h_row):
        # Classification head fused per step; exactly one (masked) row store.
        if use_sigmoid:
            out_ref[t:t + 1, :] = jax.nn.sigmoid(h_row)
        else:
            m = jnp.max(h_row, axis=1, keepdims=True)
            e = jnp.exp(h_row - m)
            inv = pl.reciprocal(jnp.sum(e, axis=1, keepdims=True), approx=True)
            out_ref[t:t + 1, :] = e * inv

    # ---- t = 0: h_0 = c_0 = 0 -> no recurrent matvec, no f*c term. ----
    i_g, _, g_g, o_g = gate_nonlin(xp[0:1, :])
    c = i_g * g_g
    h = o_g * jnp.tanh(c)
    write_out(0, h)

    # Fully unrolled recurrence (T is small & static, so every slice index is
    # static and the scheduler sees all steps).  For T beyond ~32-64 switch to
    # lax.fori_loop(..., unroll=True) to avoid instruction blowup.
    for t in range(1, T):
        # h_{t-1} @ W_hh^T without the MXU:
        #   h (1,H) --sublane bcast * I, lane reduce--> h_col (H,1)
        #   h_col --lane bcast * W_hh^T, sublane reduce--> (1,4H)
        h_col = jnp.sum(jnp.broadcast_to(h, (H, H)) * eye, axis=1, keepdims=True)
        rec = jnp.sum(jnp.broadcast_to(h_col, (H, 4 * H)) * whh,
                      axis=0, keepdims=True)

        i_g, f_g, g_g, o_g = gate_nonlin(xp[t:t + 1, :] + rec)
        c = f_g * c + i_g * g_g
        h = o_g * jnp.tanh(c)
        write_out(t, h)

    # TODO(synk): if the real workload ever has many sequences, add a leading
    # batch axis + grid=(B,) with dimension_semantics=("parallel",) so both
    # v7x TensorCores are used and the input projection becomes one big MXU call;
    # a single (T=8, H=8) sequence is pure serial latency.


def prepare_lstm_params(w_ih, w_hh, b_ih, b_hh):
    """One-time, parameter-creation-time prep so the per-call dispatch path is a
    single pallas_call (no per-call transposes / casts / reshapes).

    w_ih: (4H, E), w_hh: (4H, H), b_ih/b_hh: (4H,)  ->  (E,4H), (H,4H), (1,4H)."""
    wih_t = jnp.transpose(w_ih).astype(jnp.float32)          # (E, 4H)
    whh_t = jnp.transpose(w_hh).astype(jnp.float32)          # (H, 4H)
    bias = (b_ih + b_hh).astype(jnp.float32).reshape(1, -1)  # (1, 4H)
    return wih_t, whh_t, bias


@functools.partial(jax.jit, static_argnames=("n_classes",))
def lstm_classifier_forward(seq_rep, wih_t, whh_t, bias, *, n_classes):
    """seq_rep: (T, E); prepared params from prepare_lstm_params.
    Returns (T, H) with sigmoid (n_classes <= 2) or softmax over classes."""
    T, _ = seq_rep.shape
    H = whh_t.shape[0]
    use_sigmoid = n_classes <= 2

    kernel = functools.partial(
        _lstm_classifier_kernel, hidden=H, seq_len=T, use_sigmoid=use_sigmoid
    )

    vmem_spec = pl.BlockSpec(memory_space=pltpu.MemorySpace.VMEM)
    return pl.pallas_call(
        kernel,
        out_shape=jax.ShapeDtypeStruct((T, H), jnp.float32),
        in_specs=[vmem_spec, vmem_spec, vmem_spec, vmem_spec],
        out_specs=vmem_spec,
    )(seq_rep.astype(jnp.float32), wih_t, whh_t, bias)


def _reference(seq_rep, w_ih, w_hh, b_ih, b_hh, n_classes):
    """Pure-JAX reference matching torch.nn.LSTM semantics."""
    T, _ = seq_rep.shape
    H = w_hh.shape[1]
    h = jnp.zeros((H,), jnp.float32)
    c = jnp.zeros((H,), jnp.float32)
    outs = []
    for t in range(T):
        g = w_ih @ seq_rep[t] + b_ih + w_hh @ h + b_hh
        i = jax.nn.sigmoid(g[0 * H:1 * H])
        f = jax.nn.sigmoid(g[1 * H:2 * H])
        gg = jnp.tanh(g[2 * H:3 * H])
        o = jax.nn.sigmoid(g[3 * H:4 * H])
        c = f * c + i * gg
        h = o * jnp.tanh(c)
        outs.append(h)
    out = jnp.stack(outs)
    if n_classes <= 2:
        return jax.nn.sigmoid(out)
    return jax.nn.softmax(out, axis=1)


if __name__ == "__main__":
    # Shapes implied by the module: seq_rep (T, embed_dim), hidden = n_classes.
    embed_dim, n_classes, T = 32, 8, 8
    H = n_classes

    key = jax.random.PRNGKey(0)
    k0, k1, k2, k3, k4 = jax.random.split(key, 5)
    k_init = 1.0 / jnp.sqrt(H)  # PyTorch LSTM default uniform(-1/sqrt(H), 1/sqrt(H))

    seq_rep = jax.random.normal(k0, (T, embed_dim), dtype=jnp.float32)
    w_ih = jax.random.uniform(k1, (4 * H, embed_dim), jnp.float32, -k_init, k_init)
    w_hh = jax.random.uniform(k2, (4 * H, H), jnp.float32, -k_init, k_init)
    b_ih = jax.random.uniform(k3, (4 * H,), jnp.float32, -k_init, k_init)
    b_hh = jax.random.uniform(k4, (4 * H,), jnp.float32, -k_init, k_init)

    # One-time parameter prep (kept out of the per-call dispatch path).
    wih_t, whh_t, bias = prepare_lstm_params(w_ih, w_hh, b_ih, b_hh)

    out = lstm_classifier_forward(seq_rep, wih_t, whh_t, bias, n_classes=n_classes)
    out = jax.block_until_ready(out)

    ref = _reference(seq_rep, w_ih, w_hh, b_ih, b_hh, n_classes)
    assert out.shape == (T, H)
    # Tolerance accounts for the approx-EUP reciprocal in the softmax denominator
    # (relative error ~1e-4); everything else is exact f32.
    assert jnp.allclose(out, ref, atol=1e-3, rtol=1e-3), "mismatch vs reference"

    print("KERNEL_OK")
</pallas_src>

<mosaic_0001>
module attributes {stable_mosaic.version = 11 : i64} {
  func.func @_lstm_classifier_kernel(%arg0: memref<8x32xf32, #tpu.memory_space<vmem>>, %arg1: memref<32x32xf32, #tpu.memory_space<vmem>>, %arg2: memref<8x32xf32, #tpu.memory_space<vmem>>, %arg3: memref<1x32xf32, #tpu.memory_space<vmem>>, %arg4: memref<8x8xf32, #tpu.memory_space<vmem>>) attributes {dimension_semantics = [], scalar_prefetch = 0 : i64, scratch_operands = 0 : i64, tpu.core_type = #tpu.core_type<tc>} {
    %c0 = arith.constant 0 : index
    %c0_0 = arith.constant 0 : index
    %0 = vector.load %arg0[%c0, %c0_0] : memref<8x32xf32, #tpu.memory_space<vmem>>, vector<8x32xf32>
    %c0_1 = arith.constant 0 : index
    %c0_2 = arith.constant 0 : index
    %1 = vector.load %arg1[%c0_1, %c0_2] : memref<32x32xf32, #tpu.memory_space<vmem>>, vector<32x32xf32>
    %cst = arith.constant dense<0.000000e+00> : vector<8x32xf32>
    %2 = tpu.matmul %0, %1, %cst {dimension_numbers = #tpu.dot_dimension_numbers<[1], [0], [0], [1], [0, 0, 1, 1], [], []>} : vector<8x32xf32>, vector<32x32xf32>, vector<8x32xf32> -> vector<8x32xf32>
    %c0_3 = arith.constant 0 : index
    %c0_4 = arith.constant 0 : index
    %3 = vector.load %arg3[%c0_3, %c0_4] : memref<1x32xf32, #tpu.memory_space<vmem>>, vector<1x32xf32>
    %4 = vector.broadcast %3 : vector<1x32xf32> to vector<8x32xf32>
    %5 = arith.addf %2, %4 : vector<8x32xf32>
    %c0_5 = arith.constant 0 : index
    %c0_6 = arith.constant 0 : index
    %6 = vector.load %arg2[%c0_5, %c0_6] : memref<8x32xf32, #tpu.memory_space<vmem>>, vector<8x32xf32>
    %7 = tpu.iota {dimensions = array<i32: 0>} : vector<8x8xi32>
    %8 = tpu.iota {dimensions = array<i32: 1>} : vector<8x8xi32>
    %9 = arith.cmpi eq, %7, %8 : vector<8x8xi32>
    %10 = arith.extui %9 : vector<8x8xi1> to vector<8x8xi32>
    %11 = arith.sitofp %10 : vector<8x8xi32> to vector<8x8xf32>
    %12 = vector.extract_strided_slice %5 {offsets = [0, 0], sizes = [1, 32], strides = [1, 1]} : vector<8x32xf32> to vector<1x32xf32>
    %13 = arith.negf %12 : vector<1x32xf32>
    %14 = math.exp %13 : vector<1x32xf32>
    %cst_7 = arith.constant 1.000000e+00 : f32
    %15 = vector.broadcast %cst_7 : f32 to vector<1x32xf32>
    %16 = arith.addf %15, %14 : vector<1x32xf32>
    %17 = arith.divf %15, %16 : vector<1x32xf32>
    %18 = vector.extract_strided_slice %12 {offsets = [0, 16], sizes = [1, 8], strides = [1, 1]} : vector<1x32xf32> to vector<1x8xf32>
    %19 = math.tanh %18 : vector<1x8xf32>
    %20 = vector.extract_strided_slice %17 {offsets = [0, 0], sizes = [1, 8], strides = [1, 1]} : vector<1x32xf32> to vector<1x8xf32>
    %21 = vector.extract_strided_slice %17 {offsets = [0, 24], sizes = [1, 8], strides = [1, 1]} : vector<1x32xf32> to vector<1x8xf32>
    %22 = arith.mulf %20, %19 : vector<1x8xf32>
    %23 = math.tanh %22 : vector<1x8xf32>
    %24 = arith.mulf %21, %23 : vector<1x8xf32>
    %cst_8 = arith.constant dense<0xFF800000> : vector<1xf32>
    %25 = vector.multi_reduction <maximumf>, %24, %cst_8 [1] : vector<1x8xf32> to vector<1xf32>
    %26 = vector.shape_cast %25 : vector<1xf32> to vector<1x1xf32>
    %27 = vector.broadcast %26 : vector<1x1xf32> to vector<1x8xf32>
    %28 = arith.subf %24, %27 : vector<1x8xf32>
    %29 = math.exp %28 : vector<1x8xf32>
    %cst_9 = arith.constant dense<0.000000e+00> : vector<1xf32>
    %30 = vector.multi_reduction <add>, %29, %cst_9 [1] : vector<1x8xf32> to vector<1xf32>
    %31 = vector.shape_cast %30 : vector<1xf32> to vector<1x1xf32>
    %32 = tpu.reciprocal %31 {approx = true} : vector<1x1xf32> -> vector<1x1xf32>
    %33 = vector.broadcast %32 : vector<1x1xf32> to vector<1x8xf32>
    %34 = arith.mulf %29, %33 : vector<1x8xf32>
    %c0_10 = arith.constant 0 : index
    %c0_11 = arith.constant 0 : index
    %35 = vector.load %arg4[%c0_10, %c0_11] : memref<8x8xf32, #tpu.memory_space<vmem>>, vector<1x8xf32>
    tpu.vector_store %arg4[%c0_10, %c0_11], %34 {strides = array<i32>} : memref<8x8xf32, #tpu.memory_space<vmem>>, vector<1x8xf32>,
    %36 = vector.shape_cast %24 : vector<1x8xf32> to vector<1x8xf32>
    %37 = vector.broadcast %36 : vector<1x8xf32> to vector<8x8xf32>
    %38 = arith.mulf %37, %11 : vector<8x8xf32>
    %cst_12 = arith.constant dense<0.000000e+00> : vector<8xf32>
    %39 = vector.multi_reduction <add>, %38, %cst_12 [1] : vector<8x8xf32> to vector<8xf32>
    %40 = vector.shape_cast %39 : vector<8xf32> to vector<8x1xf32>
    %41 = vector.shape_cast %40 : vector<8x1xf32> to vector<8x1xf32>
    %42 = vector.broadcast %41 : vector<8x1xf32> to vector<8x32xf32>
    %43 = arith.mulf %42, %6 : vector<8x32xf32>
    %cst_13 = arith.constant dense<0.000000e+00> : vector<32xf32>
    %44 = vector.multi_reduction <add>, %43, %cst_13 [0] : vector<8x32xf32> to vector<32xf32>
    %45 = vector.shape_cast %44 : vector<32xf32> to vector<1x32xf32>
    %46 = vector.extract_strided_slice %5 {offsets = [1, 0], sizes = [1, 32], strides = [1, 1]} : vector<8x32xf32> to vector<1x32xf32>
    %47 = arith.addf %46, %45 : vector<1x32xf32>
    %48 = arith.negf %47 : vector<1x32xf32>
    %49 = math.exp %48 : vector<1x32xf32>
    %cst_14 = arith.constant 1.000000e+00 : f32
    %50 = vector.broadcast %cst_14 : f32 to vector<1x32xf32>
    %51 = arith.addf %50, %49 : vector<1x32xf32>
    %52 = arith.divf %50, %51 : vector<1x32xf32>
    %53 = vector.extract_strided_slice %47 {offsets = [0, 16], sizes = [1, 8], strides = [1, 1]} : vector<1x32xf32> to vector<1x8xf32>
    %54 = math.tanh %53 : vector<1x8xf32>
    %55 = vector.extract_strided_slice %52 {offsets = [0, 0], sizes = [1, 8], strides = [1, 1]} : vector<1x32xf32> to vector<1x8xf32>
    %56 = vector.extract_strided_slice %52 {offsets = [0, 8], sizes = [1, 8], strides = [1, 1]} : vector<1x32xf32> to vector<1x8xf32>
    %57 = vector.extract_strided_slice %52 {offsets = [0, 24], sizes = [1, 8], strides = [1, 1]} : vector<1x32xf32> to vector<1x8xf32>
    %58 = arith.mulf %56, %22 : vector<1x8xf32>
    %59 = arith.mulf %55, %54 : vector<1x8xf32>
    %60 = arith.addf %58, %59 : vector<1x8xf32>
    %61 = math.tanh %60 : vector<1x8xf32>
    %62 = arith.mulf %57, %61 : vector<1x8xf32>
    %cst_15 = arith.constant dense<0xFF800000> : vector<1xf32>
    %63 = vector.multi_reduction <maximumf>, %62, %cst_15 [1] : vector<1x8xf32> to vector<1xf32>
    %64 = vector.shape_cast %63 : vector<1xf32> to vector<1x1xf32>
    %65 = vector.broadcast %64 : vector<1x1xf32> to vector<1x8xf32>
    %66 = arith.subf %62, %65 : vector<1x8xf32>
    %67 = math.exp %66 : vector<1x8xf32>
    %cst_16 = arith.constant dense<0.000000e+00> : vector<1xf32>
    %68 = vector.multi_reduction <add>, %67, %cst_16 [1] : vector<1x8xf32> to vector<1xf32>
    %69 = vector.shape_cast %68 : vector<1xf32> to vector<1x1xf32>
    %70 = tpu.reciprocal %69 {approx = true} : vector<1x1xf32> -> vector<1x1xf32>
    %71 = vector.broadcast %70 : vector<1x1xf32> to vector<1x8xf32>
    %72 = arith.mulf %67, %71 : vector<1x8xf32>
    %c1 = arith.constant 1 : index
    %c0_17 = arith.constant 0 : index
    %73 = vector.load %arg4[%c1, %c0_17] : memref<8x8xf32, #tpu.memory_space<vmem>>, vector<1x8xf32>
    tpu.vector_store %arg4[%c1, %c0_17], %72 {strides = array<i32>} : memref<8x8xf32, #tpu.memory_space<vmem>>, vector<1x8xf32>,
    %74 = vector.shape_cast %62 : vector<1x8xf32> to vector<1x8xf32>
    %75 = vector.broadcast %74 : vector<1x8xf32> to vector<8x8xf32>
    %76 = arith.mulf %75, %11 : vector<8x8xf32>
    %cst_18 = arith.constant dense<0.000000e+00> : vector<8xf32>
    %77 = vector.multi_reduction <add>, %76, %cst_18 [1] : vector<8x8xf32> to vector<8xf32>
    %78 = vector.shape_cast %77 : vector<8xf32> to vector<8x1xf32>
    %79 = vector.shape_cast %78 : vector<8x1xf32> to vector<8x1xf32>
    %80 = vector.broadcast %79 : vector<8x1xf32> to vector<8x32xf32>
    %81 = arith.mulf %80, %6 : vector<8x32xf32>
    %cst_19 = arith.constant dense<0.000000e+00> : vector<32xf32>
    %82 = vector.multi_reduction <add>, %81, %cst_19 [0] : vector<8x32xf32> to vector<32xf32>
    %83 = vector.shape_cast %82 : vector<32xf32> to vector<1x32xf32>
    %84 = vector.extract_strided_slice %5 {offsets = [2, 0], sizes = [1, 32], strides = [1, 1]} : vector<8x32xf32> to vector<1x32xf32>
    %85 = arith.addf %84, %83 : vector<1x32xf32>
    %86 = arith.negf %85 : vector<1x32xf32>
    %87 = math.exp %86 : vector<1x32xf32>
    %cst_20 = arith.constant 1.000000e+00 : f32
    %88 = vector.broadcast %cst_20 : f32 to vector<1x32xf32>
    %89 = arith.addf %88, %87 : vector<1x32xf32>
    %90 = arith.divf %88, %89 : vector<1x32xf32>
    %91 = vector.extract_strided_slice %85 {offsets = [0, 16], sizes = [1, 8], strides = [1, 1]} : vector<1x32xf32> to vector<1x8xf32>
    %92 = math.tanh %91 : vector<1x8xf32>
    %93 = vector.extract_strided_slice %90 {offsets = [0, 0], sizes = [1, 8], strides = [1, 1]} : vector<1x32xf32> to vector<1x8xf32>
    %94 = vector.extract_strided_slice %90 {offsets = [0, 8], sizes = [1, 8], strides = [1, 1]} : vector<1x32xf32> to vector<1x8xf32>
    %95 = vector.extract_strided_slice %90 {offsets = [0, 24], sizes = [1, 8], strides = [1, 1]} : vector<1x32xf32> to vector<1x8xf32>
    %96 = arith.mulf %94, %60 : vector<1x8xf32>
    %97 = arith.mulf %93, %92 : vector<1x8xf32>
    %98 = arith.addf %96, %97 : vector<1x8xf32>
    %99 = math.tanh %98 : vector<1x8xf32>
    %100 = arith.mulf %95, %99 : vector<1x8xf32>
    %cst_21 = arith.constant dense<0xFF800000> : vector<1xf32>
    %101 = vector.multi_reduction <maximumf>, %100, %cst_21 [1] : vector<1x8xf32> to vector<1xf32>
    %102 = vector.shape_cast %101 : vector<1xf32> to vector<1x1xf32>
    %103 = vector.broadcast %102 : vector<1x1xf32> to vector<1x8xf32>
    %104 = arith.subf %100, %103 : vector<1x8xf32>
    %105 = math.exp %104 : vector<1x8xf32>
    %cst_22 = arith.constant dense<0.000000e+00> : vector<1xf32>
    %106 = vector.multi_reduction <add>, %105, %cst_22 [1] : vector<1x8xf32> to vector<1xf32>
    %107 = vector.shape_cast %106 : vector<1xf32> to vector<1x1xf32>
    %108 = tpu.reciprocal %107 {approx = true} : vector<1x1xf32> -> vector<1x1xf32>
    %109 = vector.broadcast %108 : vector<1x1xf32> to vector<1x8xf32>
    %110 = arith.mulf %105, %109 : vector<1x8xf32>
    %c2 = arith.constant 2 : index
    %c0_23 = arith.constant 0 : index
    %111 = vector.load %arg4[%c2, %c0_23] : memref<8x8xf32, #tpu.memory_space<vmem>>, vector<1x8xf32>
    tpu.vector_store %arg4[%c2, %c0_23], %110 {strides = array<i32>} : memref<8x8xf32, #tpu.memory_space<vmem>>, vector<1x8xf32>,
    %112 = vector.shape_cast %100 : vector<1x8xf32> to vector<1x8xf32>
    %113 = vector.broadcast %112 : vector<1x8xf32> to vector<8x8xf32>
    %114 = arith.mulf %113, %11 : vector<8x8xf32>
    %cst_24 = arith.constant dense<0.000000e+00> : vector<8xf32>
    %115 = vector.multi_reduction <add>, %114, %cst_24 [1] : vector<8x8xf32> to vector<8xf32>
    %116 = vector.shape_cast %115 : vector<8xf32> to vector<8x1xf32>
    %117 = vector.shape_cast %116 : vector<8x1xf32> to vector<8x1xf32>
    %118 = vector.broadcast %117 : vector<8x1xf32> to vector<8x32xf32>
    %119 = arith.mulf %118, %6 : vector<8x32xf32>
    %cst_25 = arith.constant dense<0.000000e+00> : vector<32xf32>
    %120 = vector.multi_reduction <add>, %119, %cst_25 [0] : vector<8x32xf32> to vector<32xf32>
    %121 = vector.shape_cast %120 : vector<32xf32> to vector<1x32xf32>
    %122 = vector.extract_strided_slice %5 {offsets = [3, 0], sizes = [1, 32], strides = [1, 1]} : vector<8x32xf32> to vector<1x32xf32>
    %123 = arith.addf %122, %121 : vector<1x32xf32>
    %124 = arith.negf %123 : vector<1x32xf32>
    %125 = math.exp %124 : vector<1x32xf32>
    %cst_26 = arith.constant 1.000000e+00 : f32
    %126 = vector.broadcast %cst_26 : f32 to vector<1x32xf32>
    %127 = arith.addf %126, %125 : vector<1x32xf32>
    %128 = arith.divf %126, %127 : vector<1x32xf32>
    %129 = vector.extract_strided_slice %123 {offsets = [0, 16], sizes = [1, 8], strides = [1, 1]} : vector<1x32xf32> to vector<1x8xf32>
    %130 = math.tanh %129 : vector<1x8xf32>
    %131 = vector.extract_strided_slice %128 {offsets = [0, 0], sizes = [1, 8], strides = [1, 1]} : vector<1x32xf32> to vector<1x8xf32>
    %132 = vector.extract_strided_slice %128 {offsets = [0, 8], sizes = [1, 8], strides = [1, 1]} : vector<1x32xf32> to vector<1x8xf32>
    %133 = vector.extract_strided_slice %128 {offsets = [0, 24], sizes = [1, 8], strides = [1, 1]} : vector<1x32xf32> to vector<1x8xf32>
    %134 = arith.mulf %132, %98 : vector<1x8xf32>
    %135 = arith.mulf %131, %130 : vector<1x8xf32>
    %136 = arith.addf %134, %135 : vector<1x8xf32>
    %137 = math.tanh %136 : vector<1x8xf32>
    %138 = arith.mulf %133, %137 : vector<1x8xf32>
    %cst_27 = arith.constant dense<0xFF800000> : vector<1xf32>
    %139 = vector.multi_reduction <maximumf>, %138, %cst_27 [1] : vector<1x8xf32> to vector<1xf32>
    %140 = vector.shape_cast %139 : vector<1xf32> to vector<1x1xf32>
    %141 = vector.broadcast %140 : vector<1x1xf32> to vector<1x8xf32>
    %142 = arith.subf %138, %141 : vector<1x8xf32>
    %143 = math.exp %142 : vector<1x8xf32>
    %cst_28 = arith.constant dense<0.000000e+00> : vector<1xf32>
    %144 = vector.multi_reduction <add>, %143, %cst_28 [1] : vector<1x8xf32> to vector<1xf32>
    %145 = vector.shape_cast %144 : vector<1xf32> to vector<1x1xf32>
    %146 = tpu.reciprocal %145 {approx = true} : vector<1x1xf32> -> vector<1x1xf32>
    %147 = vector.broadcast %146 : vector<1x1xf32> to vector<1x8xf32>
    %148 = arith.mulf %143, %147 : vector<1x8xf32>
    %c3 = arith.constant 3 : index
    %c0_29 = arith.constant 0 : index
    %149 = vector.load %arg4[%c3, %c0_29] : memref<8x8xf32, #tpu.memory_space<vmem>>, vector<1x8xf32>
    tpu.vector_store %arg4[%c3, %c0_29], %148 {strides = array<i32>} : memref<8x8xf32, #tpu.memory_space<vmem>>, vector<1x8xf32>,
    %150 = vector.shape_cast %138 : vector<1x8xf32> to vector<1x8xf32>
    %151 = vector.broadcast %150 : vector<1x8xf32> to vector<8x8xf32>
    %152 = arith.mulf %151, %11 : vector<8x8xf32>
    %cst_30 = arith.constant dense<0.000000e+00> : vector<8xf32>
    %153 = vector.multi_reduction <add>, %152, %cst_30 [1] : vector<8x8xf32> to vector<8xf32>
    %154 = vector.shape_cast %153 : vector<8xf32> to vector<8x1xf32>
    %155 = vector.shape_cast %154 : vector<8x1xf32> to vector<8x1xf32>
    %156 = vector.broadcast %155 : vector<8x1xf32> to vector<8x32xf32>
    %157 = arith.mulf %156, %6 : vector<8x32xf32>
    %cst_31 = arith.constant dense<0.000000e+00> : vector<32xf32>
    %158 = vector.multi_reduction <add>, %157, %cst_31 [0] : vector<8x32xf32> to vector<32xf32>
    %159 = vector.shape_cast %158 : vector<32xf32> to vector<1x32xf32>
    %160 = vector.extract_strided_slice %5 {offsets = [4, 0], sizes = [1, 32], strides = [1, 1]} : vector<8x32xf32> to vector<1x32xf32>
    %161 = arith.addf %160, %159 : vector<1x32xf32>
    %162 = arith.negf %161 : vector<1x32xf32>
    %163 = math.exp %162 : vector<1x32xf32>
    %cst_32 = arith.constant 1.000000e+00 : f32
    %164 = vector.broadcast %cst_32 : f32 to vector<1x32xf32>
    %165 = arith.addf %164, %163 : vector<1x32xf32>
    %166 = arith.divf %164, %165 : vector<1x32xf32>
    %167 = vector.extract_strided_slice %161 {offsets = [0, 16], sizes = [1, 8], strides = [1, 1]} : vector<1x32xf32> to vector<1x8xf32>
    %168 = math.tanh %167 : vector<1x8xf32>
    %169 = vector.extract_strided_slice %166 {offsets = [0, 0], sizes = [1, 8], strides = [1, 1]} : vector<1x32xf32> to vector<1x8xf32>
    %170 = vector.extract_strided_slice %166 {offsets = [0, 8], sizes = [1, 8], strides = [1, 1]} : vector<1x32xf32> to vector<1x8xf32>
    %171 = vector.extract_strided_slice %166 {offsets = [0, 24], sizes = [1, 8], strides = [1, 1]} : vector<1x32xf32> to vector<1x8xf32>
    %172 = arith.mulf %170, %136 : vector<1x8xf32>
    %173 = arith.mulf %169, %168 : vector<1x8xf32>
    %174 = arith.addf %172, %173 : vector<1x8xf32>
    %175 = math.tanh %174 : vector<1x8xf32>
    %176 = arith.mulf %171, %175 : vector<1x8xf32>
    %cst_33 = arith.constant dense<0xFF800000> : vector<1xf32>
    %177 = vector.multi_reduction <maximumf>, %176, %cst_33 [1] : vector<1x8xf32> to vector<1xf32>
    %178 = vector.shape_cast %177 : vector<1xf32> to vector<1x1xf32>
    %179 = vector.broadcast %178 : vector<1x1xf32> to vector<1x8xf32>
    %180 = arith.subf %176, %179 : vector<1x8xf32>
    %181 = math.exp %180 : vector<1x8xf32>
    %cst_34 = arith.constant dense<0.000000e+00> : vector<1xf32>
    %182 = vector.multi_reduction <add>, %181, %cst_34 [1] : vector<1x8xf32> to vector<1xf32>
    %183 = vector.shape_cast %182 : vector<1xf32> to vector<1x1xf32>
    %184 = tpu.reciprocal %183 {approx = true} : vector<1x1xf32> -> vector<1x1xf32>
    %185 = vector.broadcast %184 : vector<1x1xf32> to vector<1x8xf32>
    %186 = arith.mulf %181, %185 : vector<1x8xf32>
    %c4 = arith.constant 4 : index
    %c0_35 = arith.constant 0 : index
    %187 = vector.load %arg4[%c4, %c0_35] : memref<8x8xf32, #tpu.memory_space<vmem>>, vector<1x8xf32>
    tpu.vector_store %arg4[%c4, %c0_35], %186 {strides = array<i32>} : memref<8x8xf32, #tpu.memory_space<vmem>>, vector<1x8xf32>,
    %188 = vector.shape_cast %176 : vector<1x8xf32> to vector<1x8xf32>
    %189 = vector.broadcast %188 : vector<1x8xf32> to vector<8x8xf32>
    %190 = arith.mulf %189, %11 : vector<8x8xf32>
    %cst_36 = arith.constant dense<0.000000e+00> : vector<8xf32>
    %191 = vector.multi_reduction <add>, %190, %cst_36 [1] : vector<8x8xf32> to vector<8xf32>
    %192 = vector.shape_cast %191 : vector<8xf32> to vector<8x1xf32>
    %193 = vector.shape_cast %192 : vector<8x1xf32> to vector<8x1xf32>
    %194 = vector.broadcast %193 : vector<8x1xf32> to vector<8x32xf32>
    %195 = arith.mulf %194, %6 : vector<8x32xf32>
    %cst_37 = arith.constant dense<0.000000e+00> : vector<32xf32>
    %196 = vector.multi_reduction <add>, %195, %cst_37 [0] : vector<8x32xf32> to vector<32xf32>
    %197 = vector.shape_cast %196 : vector<32xf32> to vector<1x32xf32>
    %198 = vector.extract_strided_slice %5 {offsets = [5, 0], sizes = [1, 32], strides = [1, 1]} : vector<8x32xf32> to vector<1x32xf32>
    %199 = arith.addf %198, %197 : vector<1x32xf32>
    %200 = arith.negf %199 : vector<1x32xf32>
    %201 = math.exp %200 : vector<1x32xf32>
    %cst_38 = arith.constant 1.000000e+00 : f32
    %202 = vector.broadcast %cst_38 : f32 to vector<1x32xf32>
    %203 = arith.addf %202, %201 : vector<1x32xf32>
    %204 = arith.divf %202, %203 : vector<1x32xf32>
    %205 = vector.extract_strided_slice %199 {offsets = [0, 16], sizes = [1, 8], strides = [1, 1]} : vector<1x32xf32> to vector<1x8xf32>
    %206 = math.tanh %205 : vector<1x8xf32>
    %207 = vector.extract_strided_slice %204 {offsets = [0, 0], sizes = [1, 8], strides = [1, 1]} : vector<1x32xf32> to vector<1x8xf32>
    %208 = vector.extract_strided_slice %204 {offsets = [0, 8], sizes = [1, 8], strides = [1, 1]} : vector<1x32xf32> to vector<1x8xf32>
    %209 = vector.extract_strided_slice %204 {offsets = [0, 24], sizes = [1, 8], strides = [1, 1]} : vector<1x32xf32> to vector<1x8xf32>
    %210 = arith.mulf %208, %174 : vector<1x8xf32>
    %211 = arith.mulf %207, %206 : vector<1x8xf32>
    %212 = arith.addf %210, %211 : vector<1x8xf32>
    %213 = math.tanh %212 : vector<1x8xf32>
    %214 = arith.mulf %209, %213 : vector<1x8xf32>
    %cst_39 = arith.constant dense<0xFF800000> : vector<1xf32>
    %215 = vector.multi_reduction <maximumf>, %214, %cst_39 [1] : vector<1x8xf32> to vector<1xf32>
    %216 = vector.shape_cast %215 : vector<1xf32> to vector<1x1xf32>
    %217 = vector.broadcast %216 : vector<1x1xf32> to vector<1x8xf32>
    %218 = arith.subf %214, %217 : vector<1x8xf32>
    %219 = math.exp %218 : vector<1x8xf32>
    %cst_40 = arith.constant dense<0.000000e+00> : vector<1xf32>
    %220 = vector.multi_reduction <add>, %219, %cst_40 [1] : vector<1x8xf32> to vector<1xf32>
    %221 = vector.shape_cast %220 : vector<1xf32> to vector<1x1xf32>
    %222 = tpu.reciprocal %221 {approx = true} : vector<1x1xf32> -> vector<1x1xf32>
    %223 = vector.broadcast %222 : vector<1x1xf32> to vector<1x8xf32>
    %224 = arith.mulf %219, %223 : vector<1x8xf32>
    %c5 = arith.constant 5 : index
    %c0_41 = arith.constant 0 : index
    %225 = vector.load %arg4[%c5, %c0_41] : memref<8x8xf32, #tpu.memory_space<vmem>>, vector<1x8xf32>
    tpu.vector_store %arg4[%c5, %c0_41], %224 {strides = array<i32>} : memref<8x8xf32, #tpu.memory_space<vmem>>, vector<1x8xf32>,
    %226 = vector.shape_cast %214 : vector<1x8xf32> to vector<1x8xf32>
    %227 = vector.broadcast %226 : vector<1x8xf32> to vector<8x8xf32>
    %228 = arith.mulf %227, %11 : vector<8x8xf32>
    %cst_42 = arith.constant dense<0.000000e+00> : vector<8xf32>
    %229 = vector.multi_reduction <add>, %228, %cst_42 [1] : vector<8x8xf32> to vector<8xf32>
    %230 = vector.shape_cast %229 : vector<8xf32> to vector<8x1xf32>
    %231 = vector.shape_cast %230 : vector<8x1xf32> to vector<8x1xf32>
    %232 = vector.broadcast %231 : vector<8x1xf32> to vector<8x32xf32>
    %233 = arith.mulf %232, %6 : vector<8x32xf32>
    %cst_43 = arith.constant dense<0.000000e+00> : vector<32xf32>
    %234 = vector.multi_reduction <add>, %233, %cst_43 [0] : vector<8x32xf32> to vector<32xf32>
    %235 = vector.shape_cast %234 : vector<32xf32> to vector<1x32xf32>
    %236 = vector.extract_strided_slice %5 {offsets = [6, 0], sizes = [1, 32], strides = [1, 1]} : vector<8x32xf32> to vector<1x32xf32>
    %237 = arith.addf %236, %235 : vector<1x32xf32>
    %238 = arith.negf %237 : vector<1x32xf32>
    %239 = math.exp %238 : vector<1x32xf32>
    %cst_44 = arith.constant 1.000000e+00 : f32
    %240 = vector.broadcast %cst_44 : f32 to vector<1x32xf32>
    %241 = arith.addf %240, %239 : vector<1x32xf32>
    %242 = arith.divf %240, %241 : vector<1x32xf32>
    %243 = vector.extract_strided_slice %237 {offsets = [0, 16], sizes = [1, 8], strides = [1, 1]} : vector<1x32xf32> to vector<1x8xf32>
    %244 = math.tanh %243 : vector<1x8xf32>
    %245 = vector.extract_strided_slice %242 {offsets = [0, 0], sizes = [1, 8], strides = [1, 1]} : vector<1x32xf32> to vector<1x8xf32>
    %246 = vector.extract_strided_slice %242 {offsets = [0, 8], sizes = [1, 8], strides = [1, 1]} : vector<1x32xf32> to vector<1x8xf32>
    %247 = vector.extract_strided_slice %242 {offsets = [0, 24], sizes = [1, 8], strides = [1, 1]} : vector<1x32xf32> to vector<1x8xf32>
    %248 = arith.mulf %246, %212 : vector<1x8xf32>
    %249 = arith.mulf %245, %244 : vector<1x8xf32>
    %250 = arith.addf %248, %249 : vector<1x8xf32>
    %251 = math.tanh %250 : vector<1x8xf32>
    %252 = arith.mulf %247, %251 : vector<1x8xf32>
    %cst_45 = arith.constant dense<0xFF800000> : vector<1xf32>
    %253 = vector.multi_reduction <maximumf>, %252, %cst_45 [1] : vector<1x8xf32> to vector<1xf32>
    %254 = vector.shape_cast %253 : vector<1xf32> to vector<1x1xf32>
    %255 = vector.broadcast %254 : vector<1x1xf32> to vector<1x8xf32>
    %256 = arith.subf %252, %255 : vector<1x8xf32>
    %257 = math.exp %256 : vector<1x8xf32>
    %cst_46 = arith.constant dense<0.000000e+00> : vector<1xf32>
    %258 = vector.multi_reduction <add>, %257, %cst_46 [1] : vector<1x8xf32> to vector<1xf32>
    %259 = vector.shape_cast %258 : vector<1xf32> to vector<1x1xf32>
    %260 = tpu.reciprocal %259 {approx = true} : vector<1x1xf32> -> vector<1x1xf32>
    %261 = vector.broadcast %260 : vector<1x1xf32> to vector<1x8xf32>
    %262 = arith.mulf %257, %261 : vector<1x8xf32>
    %c6 = arith.constant 6 : index
    %c0_47 = arith.constant 0 : index
    %263 = vector.load %arg4[%c6, %c0_47] : memref<8x8xf32, #tpu.memory_space<vmem>>, vector<1x8xf32>
    tpu.vector_store %arg4[%c6, %c0_47], %262 {strides = array<i32>} : memref<8x8xf32, #tpu.memory_space<vmem>>, vector<1x8xf32>,
    %264 = vector.shape_cast %252 : vector<1x8xf32> to vector<1x8xf32>
    %265 = vector.broadcast %264 : vector<1x8xf32> to vector<8x8xf32>
    %266 = arith.mulf %265, %11 : vector<8x8xf32>
    %cst_48 = arith.constant dense<0.000000e+00> : vector<8xf32>
    %267 = vector.multi_reduction <add>, %266, %cst_48 [1] : vector<8x8xf32> to vector<8xf32>
    %268 = vector.shape_cast %267 : vector<8xf32> to vector<8x1xf32>
    %269 = vector.shape_cast %268 : vector<8x1xf32> to vector<8x1xf32>
    %270 = vector.broadcast %269 : vector<8x1xf32> to vector<8x32xf32>
    %271 = arith.mulf %270, %6 : vector<8x32xf32>
    %cst_49 = arith.constant dense<0.000000e+00> : vector<32xf32>
    %272 = vector.multi_reduction <add>, %271, %cst_49 [0] : vector<8x32xf32> to vector<32xf32>
    %273 = vector.shape_cast %272 : vector<32xf32> to vector<1x32xf32>
    %274 = vector.extract_strided_slice %5 {offsets = [7, 0], sizes = [1, 32], strides = [1, 1]} : vector<8x32xf32> to vector<1x32xf32>
    %275 = arith.addf %274, %273 : vector<1x32xf32>
    %276 = arith.negf %275 : vector<1x32xf32>
    %277 = math.exp %276 : vector<1x32xf32>
    %cst_50 = arith.constant 1.000000e+00 : f32
    %278 = vector.broadcast %cst_50 : f32 to vector<1x32xf32>
    %279 = arith.addf %278, %277 : vector<1x32xf32>
    %280 = arith.divf %278, %279 : vector<1x32xf32>
    %281 = vector.extract_strided_slice %275 {offsets = [0, 16], sizes = [1, 8], strides = [1, 1]} : vector<1x32xf32> to vector<1x8xf32>
    %282 = math.tanh %281 : vector<1x8xf32>
    %283 = vector.extract_strided_slice %280 {offsets = [0, 0], sizes = [1, 8], strides = [1, 1]} : vector<1x32xf32> to vector<1x8xf32>
    %284 = vector.extract_strided_slice %280 {offsets = [0, 8], sizes = [1, 8], strides = [1, 1]} : vector<1x32xf32> to vector<1x8xf32>
    %285 = vector.extract_strided_slice %280 {offsets = [0, 24], sizes = [1, 8], strides = [1, 1]} : vector<1x32xf32> to vector<1x8xf32>
    %286 = arith.mulf %284, %250 : vector<1x8xf32>
    %287 = arith.mulf %283, %282 : vector<1x8xf32>
    %288 = arith.addf %286, %287 : vector<1x8xf32>
    %289 = math.tanh %288 : vector<1x8xf32>
    %290 = arith.mulf %285, %289 : vector<1x8xf32>
    %cst_51 = arith.constant dense<0xFF800000> : vector<1xf32>
    %291 = vector.multi_reduction <maximumf>, %290, %cst_51 [1] : vector<1x8xf32> to vector<1xf32>
    %292 = vector.shape_cast %291 : vector<1xf32> to vector<1x1xf32>
    %293 = vector.broadcast %292 : vector<1x1xf32> to vector<1x8xf32>
    %294 = arith.subf %290, %293 : vector<1x8xf32>
    %295 = math.exp %294 : vector<1x8xf32>
    %cst_52 = arith.constant dense<0.000000e+00> : vector<1xf32>
    %296 = vector.multi_reduction <add>, %295, %cst_52 [1] : vector<1x8xf32> to vector<1xf32>
    %297 = vector.shape_cast %296 : vector<1xf32> to vector<1x1xf32>
    %298 = tpu.reciprocal %297 {approx = true} : vector<1x1xf32> -> vector<1x1xf32>
    %299 = vector.broadcast %298 : vector<1x1xf32> to vector<1x8xf32>
    %300 = arith.mulf %295, %299 : vector<1x8xf32>
    %c7 = arith.constant 7 : index
    %c0_53 = arith.constant 0 : index
    %301 = vector.load %arg4[%c7, %c0_53] : memref<8x8xf32, #tpu.memory_space<vmem>>, vector<1x8xf32>
    tpu.vector_store %arg4[%c7, %c0_53], %300 {strides = array<i32>} : memref<8x8xf32, #tpu.memory_space<vmem>>, vector<1x8xf32>,
    return
  }
}

</mosaic_0001>

<bundles_post_ra>
// kernel: lstm_classifier_forward.1
= control target key start
LH: loop header
LB: loop body
LE: loop exit
PB: predicated region body
PF: predicated region fallthrough
CT: control target
= control target key end

     0   :  { %9 = vsyncpa [#allocation3], 0  ;;  %s1157_s0 = inlined_call_operand.hbm [shape: f32[8,32], index: 0, kind: input, shape index: {}]   ;;  %s1158_s1 = inlined_call_operand.hbm [shape: f32[32,32], index: 1, kind: input, shape index: {}]   ;;  %s1159_s2 = inlined_call_operand.hbm [shape: f32[8,32], index: 2, kind: input, shape index: {}]   ;;  %s1160_s3 = inlined_call_operand.vmem [shape: f32[1,32], index: 3, kind: input, shape index: {}]   ;;  %s1161_s4 = inlined_call_operand.hbm [shape: f32[8,8], index: 4, kind: output, shape index: {}]  }
   0x1   :  { %10 = vsyncpa [#allocation6], 0  ;;  %s27_s17 = sshll.u32 %s1158_s1, 4  ;;  %s28_s17 = int_to_ptr.hbm [resolvable:$true] %s27_s17 }
   0x2   :  { %11 = vsyncpa [#allocation4], 0  ;;  %s960_s18 = smov [#allocation5]   ;;  %s17_s22 = sshll.u32 %s1157_s0, 4  ;;  %s18_s22 = int_to_ptr.hbm [resolvable:$true] %s17_s22 }
   0x3   :  { %s29_s19 = sshll.u32 %s960_s18, 4  ;;  %s961_s23 = smov 128   ;;  %s30_s19 = int_to_ptr.vmem [resolvable:$true] %s29_s19 }
   0x4   :  { %s962_s24 = smov 8   ;;  %s963_s25 = smov [#allocation2]  }
   0x5   :  { %35 = dma.hbm_to_vmem [thread:$0]  %s28_s17, 512, %s30_s19, [#allocation6], %s961_s23, %s961_s23, %s962_s24  }
   0x6   :  { %s19_s26 = sshll.u32 %s963_s25, 4  ;;  %s41_s1 = sshll.u32 %s1159_s2, 4  ;;  %s20_s26 = int_to_ptr.vmem [resolvable:$true] %s19_s26  ;;  %s42_s1 = int_to_ptr.hbm [resolvable:$true] %s41_s1 }
   0x7   :  { %22 = dma.hbm_to_vmem [thread:$0]  %s18_s22, 128, %s20_s26, [#allocation3]  }
   0x8   :  { %s964_s29 = smov [#allocation7]  }
   0x9   :  { %s43_s30 = sshll.u32 %s964_s29, 4  ;;  %s44_s30 = int_to_ptr.vmem [resolvable:$true] %s43_s30 }
   0xa   :  { %46 = dma.hbm_to_vmem [thread:$0]  %s42_s1, 128, %s44_s30, [#allocation6]  }
   0xb   :  { %954 = dma.done.wait [#allocation3], 128  }
   0xc   :  { %955 = vsyncadd [#allocation3], 4294967168 }
   0xd   :  { %956 = dma.done.wait [#allocation6], 640  }
   0xe   :  { %957 = vsyncadd [#allocation6], 4294966656  ;;  %v65_v0 = vld [vmem:[#allocation5 + $0x18] sm:$0xff]  ;;  %v64_v1 = vld [vmem:[#allocation5 + $0x10] sm:$0xff]  ;;  %vm70_vm0 = vcmask 261120   ;;  %s965_s5 = smov 112   ;;  %v95_v12 = vlaneseq }
   0xf   :  { %86 = vmatpush.msra.mxu0 %v65_v0  ;;  %v63_v2 = vld [vmem:[#allocation5 + $0x8] sm:$0xff]  ;;  %v62_v3 = vld [vmem:[#allocation5] sm:$0xff]  ;;  %v61_v4 = vld [vmem:[#allocation2] sm:$0xff]  ;;  %v966_v17 = vmov 0.0   ;;  %s968_s6 = smov 104   ;;  %vm165_vm6 = vcmask 64512  }
  0x10   :  { %v761_v5 = vld [vmem:[%s1160_s3] ss:$0 sm:$0xff]  ;;  %v96_v14 = vshrl.u32 %v95_v12, 7  ;;  %v98_v15 = vand.u32 127, %v95_v12  ;;  %s967_s3 = smov 24   ;;  %v1024_v38 = vld [vmem:[#allocation7] sm:$0xff] }
  0x11   :  { %87 = vmatpush.msra.mxu0 %v64_v1  ;;  %s969_s7 = smov 16   ;;  %s970_s8 = smov [#allocation8]  }
  0x12   :  { %vm99_vm1 = vcmp.eq.s32.totalorder %v96_v14, %v98_v15  ;;  %s727_s9 = sshll.u32 %s970_s8, 4  ;;  %s729_s12 = sshll.u32 %s1161_s4, 4  ;;  %s728_s9 = int_to_ptr.vmem [resolvable:$true] %s727_s9  ;;  %s730_s12 = int_to_ptr.hbm [resolvable:$true] %s729_s12 }
  0x13   :  { %88 = vmatpush.msra.mxu0 %v63_v2  ;;  %v741_v18 = vsel %vm99_vm1, 1.0, %v966_v17 }
  0x14   :  { %157 = vrot.lane.b32.xlu1 %v741_v18, %s967_s3 }
  0x15   :  { %89 = vmatpush.msra.mxu0 %v62_v3 }
  0x16   :  { %740 = vmatmul.msk.f32.vlgmr.msra.gmra.mxu0 %vm70_vm0, %v61_v4 }
  0x86   :  { %v1018_v33 = vpop.permute.xlu1 %157 }
  0x93   :  { %v91_v6 = vpop.f32.mrf.mxu0 }
  0x94   :  { %v1010_v7 = vadd.f32 %v761_v5, %v91_v6 }
  0x96   :  { %762 = vtanh.f32 %v1010_v7  ;;  %v742_v9 = vmul.f32 -1.442695, %v1010_v7 }
  0x98   :  { %764 = vpow2.f32 %v742_v9 }
  0x9c   :  { %v763_v8 = vpop.eup %762 }
  0x9d   :  { %123 = vrot.lane.b32.xlu0 %v763_v8, %s965_s5 }
  0x9e   :  { %v765_v10 = vpop.eup %764 }
  0x9f   :  { %v105_v11 = vadd.f32 1.0, %v765_v10 }
  0xa1   :  { %766 = vrcp.f32 %v105_v11  ;;  %v117_v22 = vand.u32 2147483648, %v105_v11  ;;  %vm111_vm3 = vweird.f32 %v105_v11  ;;  %v115_v23 = vand.u32 2147483647, %v105_v11 }
  0xa3   :  { %v118_v25 = vor.u32 1.1754944e-38, %v117_v22  ;;  %vm116_vm5 = vcmp.eq.f32.partialorder %v115_v23, 8.507059e+37 }
  0xa7   :  { %v767_v13 = vpop.eup %766 }
  0xa8   :  { %v107_v16 = vmul.f32 %v767_v13, %v105_v11  ;;  %vm112_vm2 = vweird.f32 %v767_v13 }
  0xa9   :  { %vm113_vm4 = vmor %vm111_vm3, %vm112_vm2 }
  0xaa   :  { %v108_v19 = vsub.f32 1.0, %v107_v16 }
  0xac   :  { %v109_v20 = vmul.f32 %v767_v13, %v108_v19 }
  0xae   :  { %v110_v21 = vadd.f32 %v767_v13, %v109_v20 }
  0xb0   :  { %v114_v24 = vsel %vm113_vm4, %v767_v13, %v110_v21 }
  0xb1   :  { %v119_v27 = vsel %vm116_vm5, %v118_v25, %v114_v24 }
 0x10f   :  { %v124_v26 = vpop.permute.xlu0 %123 }
 0x110   :  { %v126_v28 = vmul.f32 %v124_v26, %v119_v27 }
 0x112   :  { %768 = vtanh.f32 %v126_v28  ;;  %v199_v30 = vrot.slane %v126_v28, 7 }
 0x118   :  { %v769_v29 = vpop.eup %768 }
 0x119   :  { %129 = vrot.lane.b32.xlu0 %v769_v29, %s967_s3 }
 0x121   :  { %200 = vrot.lane.b32.xlu0 %v199_v30, %s962_s24 }
 0x18b   :  { %v130_v31 = vpop.permute.xlu0 %129 }
 0x18c   :  { %v1016_v32 = vmul.f32 %v130_v31, %v119_v27 }
 0x18e   :  { %v155_v34 = vperm.slane %v1016_v32, 0 }
 0x190   :  { %v160_v35 = vmul.f32 %v1018_v33, %v155_v34 }
 0x192   :  { %162 = vrot.lane.b32.xlu1 %v160_v35, %s968_s6 }
 0x193   :  { %v201_v1 = vpop.permute.xlu0 %200 }
 0x204   :  { %v163_v36 = vpop.permute.xlu1 %162 }
 0x205   :  { %v166_v37 = vsel %vm165_vm6, %v163_v36, 0.0 }
 0x206   :  { %167 = vadd.xlane.f32.xlu2 %v166_v37 }
 0x279   :  { %v168_v39 = vpop.xlane.xlu2 %167 }
 0x27a   :  { %v169_v40 = vmul.f32 %v168_v39, %v1024_v38 }
 0x27c   :  { %v170_v41 = vsel %vm70_vm0, %v169_v40, 0.0 }
 0x27d   :  { %v171_v42 = vrot.slane %v170_v41, 4 }
 0x27f   :  { %v172_v43 = vadd.f32 %v171_v42, %v170_v41 }
 0x281   :  { %v173_v44 = vrot.slane %v172_v43, 2 }
 0x283   :  { %v174_v45 = vadd.f32 %v173_v44, %v172_v43 }
 0x285   :  { %v175_v46 = vrot.slane %v174_v45, 1 }
 0x287   :  { %v176_v47 = vadd.f32 %v175_v46, %v174_v45 }
 0x289   :  { %v177_v48 = vadd.f32 %v176_v47, %v1010_v7 }
 0x28b   :  { %770 = vtanh.f32 %v177_v48  ;;  %v743_v50 = vmul.f32 -1.442695, %v177_v48 }
 0x28d   :  { %772 = vpow2.f32 %v743_v50 }
 0x291   :  { %v771_v49 = vpop.eup %770 }
 0x292   :  { %205 = vrot.lane.b32.xlu2 %v771_v49, %s965_s5 }
 0x293   :  { %v773_v51 = vpop.eup %772 }
 0x294   :  { %v181_v52 = vadd.f32 1.0, %v773_v51 }
 0x296   :  { %774 = vrcp.f32 %v181_v52  ;;  %v193_v58 = vand.u32 2147483648, %v181_v52  ;;  %vm187_vm8 = vweird.f32 %v181_v52  ;;  %v191_v59 = vand.u32 2147483647, %v181_v52 }
 0x298   :  { %v194_v61 = vor.u32 1.1754944e-38, %v193_v58  ;;  %vm192_vm10 = vcmp.eq.f32.partialorder %v191_v59, 8.507059e+37 }
 0x29c   :  { %v775_v53 = vpop.eup %774 }
 0x29d   :  { %v183_v54 = vmul.f32 %v775_v53, %v181_v52  ;;  %vm188_vm7 = vweird.f32 %v775_v53 }
 0x29e   :  { %vm189_vm9 = vmor %vm187_vm8, %vm188_vm7 }
 0x29f   :  { %v184_v55 = vsub.f32 1.0, %v183_v54 }
 0x2a1   :  { %v185_v56 = vmul.f32 %v775_v53, %v184_v55 }
 0x2a3   :  { %v186_v57 = vadd.f32 %v775_v53, %v185_v56 }
 0x2a5   :  { %v190_v60 = vsel %vm189_vm9, %v775_v53, %v186_v57 }
 0x2a6   :  { %v195_v63 = vsel %vm192_vm10, %v194_v61, %v190_v60 }
 0x2a7   :  { %v203_v2 = vmul.f32 %v201_v1, %v195_v63 }
 0x2ec   :  { %v206_v62 = vpop.permute.xlu2 %205 }
 0x2ed   :  { %v208_v0 = vmul.f32 %v206_v62, %v195_v63 }
 0x2ef   :  { %210 = vrot.lane.b32.xlu1 %v208_v0, %s962_s24 }
 0x361   :  { %v211_v3 = vpop.permute.xlu1 %210 }
 0x362   :  { %v213_v4 = vadd.f32 %v211_v3, %v203_v2 }
 0x364   :  { %776 = vtanh.f32 %v213_v4  ;;  %v281_v42 = vrot.slane %v213_v4, 7 }
 0x36a   :  { %v777_v5 = vpop.eup %776 }
 0x36b   :  { %216 = vrot.lane.b32.xlu0 %v777_v5, %s969_s7 }
 0x3dd   :  { %v217_v6 = vpop.permute.xlu0 %216 }
 0x3de   :  { %v1032_v8 = vmul.f32 %v217_v6, %v195_v63 }
 0x3e0   :  { %v242_v9 = vperm.slane %v1032_v8, 1 }
 0x3e2   :  { %v243_v10 = vmul.f32 %v242_v9, %v1018_v33 }
 0x3e4   :  { %245 = vrot.lane.b32.xlu1 %v243_v10, %s968_s6 }
 0x456   :  { %v246_v11 = vpop.permute.xlu1 %245 }
 0x457   :  { %v248_v12 = vsel %vm165_vm6, %v246_v11, 0.0 }
 0x458   :  { %249 = vadd.xlane.f32.xlu0 %v248_v12 }
 0x4cb   :  { %v250_v13 = vpop.xlane.xlu0 %249 }
 0x4cc   :  { %v251_v14 = vmul.f32 %v250_v13, %v1024_v38 }
 0x4ce   :  { %v252_v15 = vsel %vm70_vm0, %v251_v14, 0.0 }
 0x4cf   :  { %v253_v16 = vrot.slane %v252_v15, 4 }
 0x4d1   :  { %v254_v17 = vadd.f32 %v253_v16, %v252_v15 }
 0x4d3   :  { %v255_v18 = vrot.slane %v254_v17, 2 }
 0x4d5   :  { %v256_v19 = vadd.f32 %v255_v18, %v254_v17 }
 0x4d7   :  { %v257_v20 = vrot.slane %v256_v19, 1 }
 0x4d9   :  { %v258_v21 = vadd.f32 %v257_v20, %v256_v19 }
 0x4db   :  { %v259_v22 = vadd.f32 %v258_v21, %v1010_v7 }
 0x4dd   :  { %778 = vtanh.f32 %v259_v22  ;;  %v744_v24 = vmul.f32 -1.442695, %v259_v22 }
 0x4df   :  { %780 = vpow2.f32 %v744_v24 }
 0x4e3   :  { %v779_v23 = vpop.eup %778 }
 0x4e4   :  { %285 = vrot.lane.b32.xlu1 %v779_v23, %s965_s5 }
 0x4e5   :  { %v781_v25 = vpop.eup %780 }
 0x4e6   :  { %v263_v26 = vadd.f32 1.0, %v781_v25 }
 0x4e8   :  { %782 = vrcp.f32 %v263_v26  ;;  %v275_v34 = vand.u32 2147483648, %v263_v26  ;;  %vm269_vm12 = vweird.f32 %v263_v26  ;;  %v273_v35 = vand.u32 2147483647, %v263_v26 }
 0x4ea   :  { %v276_v37 = vor.u32 1.1754944e-38, %v275_v34  ;;  %vm274_vm14 = vcmp.eq.f32.partialorder %v273_v35, 8.507059e+37 }
 0x4ee   :  { %v783_v27 = vpop.eup %782 }
 0x4ef   :  { %v265_v28 = vmul.f32 %v783_v27, %v263_v26  ;;  %vm270_vm11 = vweird.f32 %v783_v27 }
 0x4f0   :  { %vm271_vm13 = vmor %vm269_vm12, %vm270_vm11 }
 0x4f1   :  { %v266_v29 = vsub.f32 1.0, %v265_v28 }
 0x4f3   :  { %v267_v30 = vmul.f32 %v783_v27, %v266_v29 }
 0x4f5   :  { %v268_v31 = vadd.f32 %v783_v27, %v267_v30 }
 0x4f7   :  { %v272_v36 = vsel %vm271_vm13, %v783_v27, %v268_v31 }
 0x4f8   :  { %v277_v40 = vsel %vm274_vm14, %v276_v37, %v272_v36 }
 0x4f9   :  { %v283_v43 = vmul.f32 %v281_v42, %v277_v40 }
 0x556   :  { %v286_v39 = vpop.permute.xlu1 %285 }
 0x557   :  { %v288_v41 = vmul.f32 %v286_v39, %v277_v40 }
 0x559   :  { %290 = vrot.lane.b32.xlu2 %v288_v41, %s962_s24 }
 0x5b3   :  { %v291_v44 = vpop.permute.xlu2 %290 }
 0x5b4   :  { %v293_v45 = vadd.f32 %v291_v44, %v283_v43 }
 0x5b6   :  { %784 = vtanh.f32 %v293_v45  ;;  %v361_v17 = vrot.slane %v293_v45, 7 }
 0x5bc   :  { %v785_v46 = vpop.eup %784 }
 0x5bd   :  { %296 = vrot.lane.b32.xlu1 %v785_v46, %s969_s7 }
 0x62f   :  { %v297_v47 = vpop.permute.xlu1 %296 }
 0x630   :  { %v1044_v48 = vmul.f32 %v297_v47, %v277_v40 }
 0x632   :  { %v322_v49 = vperm.slane %v1044_v48, 2 }
 0x634   :  { %v323_v50 = vmul.f32 %v322_v49, %v1018_v33 }
 0x636   :  { %325 = vrot.lane.b32.xlu2 %v323_v50, %s968_s6 }
 0x690   :  { %v326_v51 = vpop.permute.xlu2 %325 }
 0x691   :  { %v328_v52 = vsel %vm165_vm6, %v326_v51, 0.0 }
 0x692   :  { %329 = vadd.xlane.f32.xlu1 %v328_v52 }
 0x705   :  { %v330_v53 = vpop.xlane.xlu1 %329 }
 0x706   :  { %v331_v54 = vmul.f32 %v330_v53, %v1024_v38 }
 0x708   :  { %v332_v55 = vsel %vm70_vm0, %v331_v54, 0.0 }
 0x709   :  { %v333_v56 = vrot.slane %v332_v55, 4 }
 0x70b   :  { %v334_v57 = vadd.f32 %v333_v56, %v332_v55 }
 0x70d   :  { %v335_v58 = vrot.slane %v334_v57, 2 }
 0x70f   :  { %v336_v59 = vadd.f32 %v335_v58, %v334_v57 }
 0x711   :  { %v337_v60 = vrot.slane %v336_v59, 1 }
 0x713   :  { %v338_v61 = vadd.f32 %v337_v60, %v336_v59 }
 0x715   :  { %v339_v62 = vadd.f32 %v338_v61, %v1010_v7 }
 0x717   :  { %786 = vtanh.f32 %v339_v62  ;;  %v745_v0 = vmul.f32 -1.442695, %v339_v62 }
 0x719   :  { %788 = vpow2.f32 %v745_v0 }
 0x71d   :  { %v787_v63 = vpop.eup %786 }
 0x71e   :  { %365 = vrot.lane.b32.xlu2 %v787_v63, %s965_s5 }
 0x71f   :  { %v789_v1 = vpop.eup %788 }
 0x720   :  { %v343_v2 = vadd.f32 1.0, %v789_v1 }
 0x722   :  { %790 = vrcp.f32 %v343_v2  ;;  %v355_v10 = vand.u32 2147483648, %v343_v2  ;;  %vm349_vm1 = vweird.f32 %v343_v2  ;;  %v353_v11 = vand.u32 2147483647, %v343_v2 }
 0x724   :  { %v356_v13 = vor.u32 1.1754944e-38, %v355_v10  ;;  %vm354_vm3 = vcmp.eq.f32.partialorder %v353_v11, 8.507059e+37 }
 0x728   :  { %v791_v3 = vpop.eup %790 }
 0x729   :  { %v345_v4 = vmul.f32 %v791_v3, %v343_v2  ;;  %vm350_vm15 = vweird.f32 %v791_v3 }
 0x72a   :  { %vm351_vm2 = vmor %vm349_vm1, %vm350_vm15 }
 0x72b   :  { %v346_v5 = vsub.f32 1.0, %v345_v4 }
 0x72d   :  { %v347_v6 = vmul.f32 %v791_v3, %v346_v5 }
 0x72f   :  { %v348_v9 = vadd.f32 %v791_v3, %v347_v6 }
 0x731   :  { %v352_v12 = vsel %vm351_vm2, %v791_v3, %v348_v9  ;;  %vm133_vm2 = vcmask 254144  }
 0x732   :  { %v357_v15 = vsel %vm354_vm3, %v356_v13, %v352_v12  ;;  %vm220_vm3 = vcmask 255169  }
 0x733   :  { %v363_v18 = vmul.f32 %v361_v17, %v357_v15 }
 0x778   :  { %v366_v14 = vpop.permute.xlu2 %365 }
 0x779   :  { %v368_v16 = vmul.f32 %v366_v14, %v357_v15 }
 0x77b   :  { %370 = vrot.lane.b32.xlu2 %v368_v16, %s962_s24 }
 0x7d5   :  { %v371_v19 = vpop.permute.xlu2 %370 }
 0x7d6   :  { %v373_v20 = vadd.f32 %v371_v19, %v363_v18 }
 0x7d8   :  { %792 = vtanh.f32 %v373_v20  ;;  %v441_v58 = vrot.slane %v373_v20, 7 }
 0x7de   :  { %v793_v21 = vpop.eup %792 }
 0x7df   :  { %376 = vrot.lane.b32.xlu2 %v793_v21, %s969_s7 }
 0x839   :  { %v377_v22 = vpop.permute.xlu2 %376 }
 0x83a   :  { %v1056_v23 = vmul.f32 %v377_v22, %v357_v15 }
 0x83c   :  { %v402_v24 = vperm.slane %v1056_v23, 3 }
 0x83e   :  { %v403_v25 = vmul.f32 %v402_v24, %v1018_v33 }
 0x840   :  { %405 = vrot.lane.b32.xlu2 %v403_v25, %s968_s6 }
 0x89a   :  { %v406_v26 = vpop.permute.xlu2 %405 }
 0x89b   :  { %v408_v27 = vsel %vm165_vm6, %v406_v26, 0.0 }
 0x89c   :  { %409 = vadd.xlane.f32.xlu0 %v408_v27 }
 0x90f   :  { %v410_v28 = vpop.xlane.xlu0 %409 }
 0x910   :  { %v411_v29 = vmul.f32 %v410_v28, %v1024_v38 }
 0x912   :  { %v412_v30 = vsel %vm70_vm0, %v411_v29, 0.0 }
 0x913   :  { %v413_v31 = vrot.slane %v412_v30, 4 }
 0x915   :  { %v414_v34 = vadd.f32 %v413_v31, %v412_v30 }
 0x917   :  { %v415_v35 = vrot.slane %v414_v34, 2 }
 0x919   :  { %v416_v36 = vadd.f32 %v415_v35, %v414_v34 }
 0x91b   :  { %v417_v37 = vrot.slane %v416_v36, 1 }
 0x91d   :  { %v418_v39 = vadd.f32 %v417_v37, %v416_v36 }
 0x91f   :  { %v419_v40 = vadd.f32 %v418_v39, %v1010_v7 }
 0x921   :  { %794 = vtanh.f32 %v419_v40  ;;  %v746_v42 = vmul.f32 -1.442695, %v419_v40 }
 0x923   :  { %796 = vpow2.f32 %v746_v42 }
 0x927   :  { %v795_v41 = vpop.eup %794 }
 0x928   :  { %445 = vrot.lane.b32.xlu2 %v795_v41, %s965_s5 }
 0x929   :  { %v797_v43 = vpop.eup %796 }
 0x92a   :  { %v423_v44 = vadd.f32 1.0, %v797_v43 }
 0x92c   :  { %798 = vrcp.f32 %v423_v44  ;;  %v435_v51 = vand.u32 2147483648, %v423_v44  ;;  %vm429_vm5 = vweird.f32 %v423_v44  ;;  %v433_v52 = vand.u32 2147483647, %v423_v44 }
 0x92e   :  { %v436_v54 = vor.u32 1.1754944e-38, %v435_v51  ;;  %vm434_vm8 = vcmp.eq.f32.partialorder %v433_v52, 8.507059e+37 }
 0x932   :  { %v799_v45 = vpop.eup %798 }
 0x933   :  { %v425_v46 = vmul.f32 %v799_v45, %v423_v44  ;;  %vm430_vm4 = vweird.f32 %v799_v45 }
 0x934   :  { %vm431_vm7 = vmor %vm429_vm5, %vm430_vm4  ;;  %vm144_vm4 = vcmask 57344   ;;  %vm380_vm5 = vcmask 257219  }
 0x935   :  { %v426_v47 = vsub.f32 1.0, %v425_v46 }
 0x937   :  { %v427_v49 = vmul.f32 %v799_v45, %v426_v47 }
 0x939   :  { %v428_v50 = vadd.f32 %v799_v45, %v427_v49 }
 0x93b   :  { %v432_v53 = vsel %vm431_vm7, %v799_v45, %v428_v50 }
 0x93c   :  { %v437_v56 = vsel %vm434_vm8, %v436_v54, %v432_v53 }
 0x93d   :  { %v443_v59 = vmul.f32 %v441_v58, %v437_v56 }
 0x982   :  { %v446_v55 = vpop.permute.xlu2 %445 }
 0x983   :  { %v448_v57 = vmul.f32 %v446_v55, %v437_v56 }
 0x985   :  { %450 = vrot.lane.b32.xlu0 %v448_v57, %s962_s24 }
 0x9f7   :  { %v451_v60 = vpop.permute.xlu0 %450 }
 0x9f8   :  { %v453_v61 = vadd.f32 %v451_v60, %v443_v59 }
 0x9fa   :  { %800 = vtanh.f32 %v453_v61  ;;  %v521_v36 = vrot.slane %v453_v61, 7 }
 0xa00   :  { %v801_v62 = vpop.eup %800 }
 0xa01   :  { %456 = vrot.lane.b32.xlu2 %v801_v62, %s969_s7 }
 0xa5b   :  { %v457_v63 = vpop.permute.xlu2 %456 }
 0xa5c   :  { %v1068_v0 = vmul.f32 %v457_v63, %v437_v56 }
 0xa5e   :  { %v482_v1 = vperm.slane %v1068_v0, 4 }
 0xa60   :  { %v483_v2 = vmul.f32 %v482_v1, %v1018_v33 }
 0xa62   :  { %485 = vrot.lane.b32.xlu1 %v483_v2, %s968_s6 }
 0xad4   :  { %v486_v3 = vpop.permute.xlu1 %485 }
 0xad5   :  { %v488_v4 = vsel %vm165_vm6, %v486_v3, 0.0 }
 0xad6   :  { %489 = vadd.xlane.f32.xlu2 %v488_v4 }
 0xb49   :  { %v490_v5 = vpop.xlane.xlu2 %489 }
 0xb4a   :  { %v491_v6 = vmul.f32 %v490_v5, %v1024_v38 }
 0xb4c   :  { %v492_v9 = vsel %vm70_vm0, %v491_v6, 0.0 }
 0xb4d   :  { %v493_v10 = vrot.slane %v492_v9, 4 }
 0xb4f   :  { %v494_v11 = vadd.f32 %v493_v10, %v492_v9 }
 0xb51   :  { %v495_v12 = vrot.slane %v494_v11, 2 }
 0xb53   :  { %v496_v13 = vadd.f32 %v495_v12, %v494_v11 }
 0xb55   :  { %v497_v14 = vrot.slane %v496_v13, 1 }
 0xb57   :  { %v498_v15 = vadd.f32 %v497_v14, %v496_v13 }
 0xb59   :  { %v499_v16 = vadd.f32 %v498_v15, %v1010_v7 }
 0xb5b   :  { %802 = vtanh.f32 %v499_v16  ;;  %v747_v18 = vmul.f32 -1.442695, %v499_v16 }
 0xb5d   :  { %804 = vpow2.f32 %v747_v18 }
 0xb61   :  { %v803_v17 = vpop.eup %802 }
 0xb62   :  { %525 = vrot.lane.b32.xlu0 %v803_v17, %s965_s5 }
 0xb63   :  { %v805_v19 = vpop.eup %804 }
 0xb64   :  { %v503_v20 = vadd.f32 1.0, %v805_v19  ;;  %v134_v19 = vsel %vm133_vm2, %v1016_v32, -inf  ;;  %vm471_vm2 = vcmask 61444  }
 0xb66   :  { %806 = vrcp.f32 %v503_v20  ;;  %v515_v27 = vand.u32 2147483648, %v503_v20  ;;  %vm509_vm10 = vweird.f32 %v503_v20  ;;  %v513_v28 = vand.u32 2147483647, %v503_v20 }
 0xb68   :  { %v516_v30 = vor.u32 1.1754944e-38, %v515_v27  ;;  %vm514_vm12 = vcmp.eq.f32.partialorder %v513_v28, 8.507059e+37 }
 0xb6c   :  { %v807_v21 = vpop.eup %806 }
 0xb6d   :  { %v505_v22 = vmul.f32 %v807_v21, %v503_v20  ;;  %vm510_vm9 = vweird.f32 %v807_v21  ;;  %v221_v20 = vsel %vm220_vm3, %v1032_v8, -inf  ;;  %vm631_vm3 = vcmask 63494  }
 0xb6e   :  { %vm511_vm11 = vmor %vm509_vm10, %vm510_vm9 }
 0xb6f   :  { %v506_v24 = vsub.f32 1.0, %v505_v22 }
 0xb71   :  { %v507_v25 = vmul.f32 %v807_v21, %v506_v24 }
 0xb73   :  { %v508_v26 = vadd.f32 %v807_v21, %v507_v25 }
 0xb75   :  { %v512_v29 = vsel %vm511_vm11, %v807_v21, %v508_v26  ;;  %vm311_vm11 = vcmask 59394  }
 0xb76   :  { %v517_v34 = vsel %vm514_vm12, %v516_v30, %v512_v29  ;;  %vm460_vm12 = vcmask 258244  }
 0xb77   :  { %v523_v37 = vmul.f32 %v521_v36, %v517_v34 }
 0xbd4   :  { %v526_v31 = vpop.permute.xlu0 %525 }
 0xbd5   :  { %v528_v35 = vmul.f32 %v526_v31, %v517_v34 }
 0xbd7   :  { %530 = vrot.lane.b32.xlu0 %v528_v35, %s962_s24 }
 0xc49   :  { %v531_v39 = vpop.permute.xlu0 %530 }
 0xc4a   :  { %v533_v40 = vadd.f32 %v531_v39, %v523_v37 }
 0xc4c   :  { %808 = vtanh.f32 %v533_v40  ;;  %v601_v14 = vrot.slane %v533_v40, 7 }
 0xc52   :  { %v809_v41 = vpop.eup %808 }
 0xc53   :  { %536 = vrot.lane.b32.xlu1 %v809_v41, %s969_s7 }
 0xcc5   :  { %v537_v42 = vpop.permute.xlu1 %536 }
 0xcc6   :  { %v1080_v43 = vmul.f32 %v537_v42, %v517_v34 }
 0xcc8   :  { %v562_v44 = vperm.slane %v1080_v43, 5 }
 0xcca   :  { %v563_v45 = vmul.f32 %v562_v44, %v1018_v33 }
 0xccc   :  { %565 = vrot.lane.b32.xlu0 %v563_v45, %s968_s6 }
 0xd3e   :  { %v566_v46 = vpop.permute.xlu0 %565 }
 0xd3f   :  { %v568_v47 = vsel %vm165_vm6, %v566_v46, 0.0 }
 0xd40   :  { %569 = vadd.xlane.f32.xlu1 %v568_v47 }
 0xdb3   :  { %v570_v49 = vpop.xlane.xlu1 %569 }
 0xdb4   :  { %v571_v50 = vmul.f32 %v570_v49, %v1024_v38 }
 0xdb6   :  { %v572_v51 = vsel %vm70_vm0, %v571_v50, 0.0 }
 0xdb7   :  { %v573_v52 = vrot.slane %v572_v51, 4 }
 0xdb9   :  { %v574_v53 = vadd.f32 %v573_v52, %v572_v51 }
 0xdbb   :  { %v575_v54 = vrot.slane %v574_v53, 2 }
 0xdbd   :  { %v576_v55 = vadd.f32 %v575_v54, %v574_v53 }
 0xdbf   :  { %v577_v56 = vrot.slane %v576_v55, 1 }
 0xdc1   :  { %v578_v57 = vadd.f32 %v577_v56, %v576_v55 }
 0xdc3   :  { %v579_v58 = vadd.f32 %v578_v57, %v1010_v7 }
 0xdc5   :  { %810 = vtanh.f32 %v579_v58  ;;  %v748_v60 = vmul.f32 -1.442695, %v579_v58 }
 0xdc7   :  { %812 = vpow2.f32 %v748_v60 }
 0xdcb   :  { %v811_v59 = vpop.eup %810 }
 0xdcc   :  { %605 = vrot.lane.b32.xlu0 %v811_v59, %s965_s5 }
 0xdcd   :  { %v813_v61 = vpop.eup %812 }
 0xdce   :  { %v583_v62 = vadd.f32 1.0, %v813_v61  ;;  %v381_v61 = vsel %vm380_vm5, %v1056_v23, -inf }
 0xdd0   :  { %814 = vrcp.f32 %v583_v62  ;;  %v595_v5 = vand.u32 2147483648, %v583_v62  ;;  %vm589_vm14 = vweird.f32 %v583_v62  ;;  %v593_v6 = vand.u32 2147483647, %v583_v62 }
 0xdd2   :  { %v596_v10 = vor.u32 1.1754944e-38, %v595_v5  ;;  %vm594_vm1 = vcmp.eq.f32.partialorder %v593_v6, 8.507059e+37 }
 0xdd6   :  { %v815_v63 = vpop.eup %814 }
 0xdd7   :  { %v585_v1 = vmul.f32 %v815_v63, %v583_v62  ;;  %vm590_vm13 = vweird.f32 %v815_v63 }
 0xdd8   :  { %vm591_vm15 = vmor %vm589_vm14, %vm590_vm13  ;;  %vm391_vm13 = vcmask 60419   ;;  %vm620_vm14 = vcmask 260294  }
 0xdd9   :  { %v586_v2 = vsub.f32 1.0, %v585_v1 }
 0xddb   :  { %v587_v3 = vmul.f32 %v815_v63, %v586_v2 }
 0xddd   :  { %v588_v4 = vadd.f32 %v815_v63, %v587_v3 }
 0xddf   :  { %v592_v9 = vsel %vm591_vm15, %v815_v63, %v588_v4  ;;  %vm700_vm15 = vcmask 261319  }
 0xde0   :  { %v597_v12 = vsel %vm594_vm1, %v596_v10, %v592_v9  ;;  %vm540_vm1 = vcmask 259269  }
 0xde1   :  { %v603_v15 = vmul.f32 %v601_v14, %v597_v12 }
 0xe3e   :  { %v606_v11 = vpop.permute.xlu0 %605 }
 0xe3f   :  { %v608_v13 = vmul.f32 %v606_v11, %v597_v12 }
 0xe41   :  { %610 = vrot.lane.b32.xlu0 %v608_v13, %s962_s24 }
 0xeb3   :  { %v611_v16 = vpop.permute.xlu0 %610 }
 0xeb4   :  { %v1091_v17 = vadd.f32 %v611_v16, %v603_v15 }
 0xeb6   :  { %816 = vtanh.f32 %v1091_v17 }
 0xebc   :  { %v817_v18 = vpop.eup %816 }
 0xebd   :  { %616 = vrot.lane.b32.xlu2 %v817_v18, %s969_s7 }
 0xee6   :  { %135 = vmax.xlane.f32.xlu2 %v134_v19 }
 0xeee   :  { %222 = vmax.xlane.f32.xlu2 %v221_v20 }
 0xf17   :  { %v617_v21 = vpop.permute.xlu2 %616 }
 0xf18   :  { %v1097_v22 = vmul.f32 %v617_v21, %v597_v12 }
 0xf1a   :  { %v642_v24 = vperm.slane %v1097_v22, 6 }
 0xf1c   :  { %v643_v25 = vmul.f32 %v642_v24, %v1018_v33 }
 0xf1e   :  { %645 = vrot.lane.b32.xlu0 %v643_v25, %s968_s6 }
 0xf59   :  { %v136_v26 = vpop.xlane.xlu2 %135 }
 0xf5a   :  { %v137_v27 = vsub.f32 %v1016_v32, %v136_v26 }
 0xf5c   :  { %v138_v28 = vmul.f32 1.442695, %v137_v27  ;;  %v461_v27 = vsel %vm460_vm12, %v1068_v0, -inf }
 0xf5e   :  { %818 = vpow2.f32 %v138_v28 }
 0xf61   :  { %v223_v49 = vpop.xlane.xlu2 %222 }
 0xf62   :  { %v224_v50 = vsub.f32 %v1032_v8, %v223_v49 }
 0xf64   :  { %v819_v29 = vpop.eup %818  ;;  %v225_v52 = vmul.f32 1.442695, %v224_v50 }
 0xf65   :  { %141 = vrot.lane.b32.xlu1 %v819_v29, %s968_s6 }
 0xf90   :  { %v646_v30 = vpop.permute.xlu0 %645 }
 0xf91   :  { %v648_v31 = vsel %vm165_vm6, %v646_v30, 0.0  ;;  %vm300_vm6 = vcmask 256194   ;;  %v681_v30 = vrot.slane %v1091_v17, 7 }
 0xf92   :  { %649 = vadd.xlane.f32.xlu0 %v648_v31  ;;  %v301_v47 = vsel %vm300_vm6, %v1044_v48, -inf  ;;  %vm711_vm6 = vcmask 64519  }
 0xfd7   :  { %v142_v34 = vpop.permute.xlu1 %141 }
 0xfd8   :  { %v145_v35 = vsel %vm144_vm4, %v142_v34, 0.0 }
 0xfd9   :  { %146 = vadd.xlane.f32.xlu1 %v145_v35 }
0x1005   :  { %v650_v33 = vpop.xlane.xlu0 %649 }
0x1006   :  { %v651_v36 = vmul.f32 %v650_v33, %v1024_v38 }
0x1008   :  { %v652_v37 = vsel %vm70_vm0, %v651_v36, 0.0  ;;  %vm231_vm0 = vcmask 58369  }
0x1009   :  { %v653_v32 = vrot.slane %v652_v37, 4 }
0x100b   :  { %v654_v39 = vadd.f32 %v653_v32, %v652_v37  ;;  %v621_v32 = vsel %vm620_vm14, %v1097_v22, -inf }
0x100d   :  { %v655_v40 = vrot.slane %v654_v39, 2 }
0x100f   :  { %v656_v41 = vadd.f32 %v655_v40, %v654_v39 }
0x1011   :  { %v657_v42 = vrot.slane %v656_v41, 1 }
0x1013   :  { %v658_v44 = vadd.f32 %v657_v42, %v656_v41 }
0x1015   :  { %v659_v45 = vadd.f32 %v658_v44, %v1010_v7 }
0x1017   :  { %820 = vtanh.f32 %v659_v45  ;;  %v749_v62 = vmul.f32 -1.442695, %v659_v45 }
0x101d   :  { %v821_v46 = vpop.eup %820 }
0x101e   :  { %685 = vrot.lane.b32.xlu2 %v821_v46, %s965_s5 }
0x1047   :  { %302 = vmax.xlane.f32.xlu2 %v301_v47 }
0x104c   :  { %v147_v38 = vpop.xlane.xlu1 %146 }
0x104d   :  { %822 = vrcp.f32 %v147_v38 }
0x104e   :  { %824 = vpow2.f32 %v225_v52 }
0x1053   :  { %v823_v51 = vpop.eup %822 }
0x1054   :  { %v149_v53 = vmul.f32 %v823_v51, %v819_v29  ;;  %v825_v7 = vpop.eup %824 }
0x1056   :  { %151 = vrot.lane.b32.xlu0 %v149_v53, %s968_s6 }
0x105e   :  { %228 = vrot.lane.b32.xlu0 %v825_v7, %s968_s6 }
0x1078   :  { %v686_v55 = vpop.permute.xlu2 %685 }
0x10ba   :  { %v303_v58 = vpop.xlane.xlu2 %302 }
0x10bb   :  { %v304_v8 = vsub.f32 %v1044_v48, %v303_v58 }
0x10bd   :  { %v305_v59 = vmul.f32 1.442695, %v304_v8 }
0x10bf   :  { %826 = vpow2.f32 %v305_v59 }
0x10c0   :  { %828 = vpow2.f32 %v749_v62 }
0x10c5   :  { %v827_v60 = vpop.eup %826 }
0x10c6   :  { %v829_v63 = vpop.eup %828 }
0x10c7   :  { %v663_v1 = vadd.f32 1.0, %v829_v63 }
0x10c8   :  { %v152_v54 = vpop.permute.xlu0 %151 }
0x10c9   :  { %154 = vst.msk [vmem:[#allocation8] sm:$0x1] %vm144_vm4, %v152_v54  ;;  %830 = vrcp.f32 %v663_v1  ;;  %v675_v11 = vand.u32 2147483648, %v663_v1  ;;  %vm669_vm8 = vweird.f32 %v663_v1  ;;  %v673_v12 = vand.u32 2147483647, %v663_v1 }
0x10ca   :  { %vm551_vm4 = vcmask 62469  }
0x10cb   :  { %v676_v14 = vor.u32 1.1754944e-38, %v675_v11  ;;  %vm674_vm10 = vcmp.eq.f32.partialorder %v673_v12, 8.507059e+37 }
0x10cf   :  { %v831_v2 = vpop.eup %830 }
0x10d0   :  { %v229_v56 = vpop.permute.xlu0 %228  ;;  %v665_v3 = vmul.f32 %v831_v2, %v663_v1  ;;  %vm670_vm7 = vweird.f32 %v831_v2 }
0x10d1   :  { %v232_v57 = vsel %vm231_vm0, %v229_v56, 0.0  ;;  %vm671_vm9 = vmor %vm669_vm8, %vm670_vm7 }
0x10d2   :  { %233 = vadd.xlane.f32.xlu0 %v232_v57  ;;  %v666_v4 = vsub.f32 1.0, %v665_v3 }
0x10d4   :  { %v667_v48 = vmul.f32 %v831_v2, %v666_v4 }
0x10d6   :  { %v668_v9 = vadd.f32 %v831_v2, %v667_v48 }
0x10d8   :  { %v672_v13 = vsel %vm671_vm9, %v831_v2, %v668_v9 }
0x10d9   :  { %v677_v15 = vsel %vm674_vm10, %v676_v14, %v672_v13 }
0x10da   :  { %v688_v16 = vmul.f32 %v686_v55, %v677_v15  ;;  %v683_v31 = vmul.f32 %v681_v30, %v677_v15 }
0x10e6   :  { %308 = vrot.lane.b32.xlu0 %v827_v60, %s968_s6 }
0x1110   :  { %382 = vmax.xlane.f32.xlu0 %v381_v61 }
0x1145   :  { %v234_v5 = vpop.xlane.xlu0 %233 }
0x1146   :  { %832 = vrcp.f32 %v234_v5 }
0x114c   :  { %v833_v6 = vpop.eup %832 }
0x114d   :  { %v236_v10 = vmul.f32 %v833_v6, %v825_v7 }
0x114f   :  { %238 = vrot.lane.b32.xlu1 %v236_v10, %s968_s6 }
0x1157   :  { %690 = vrot.lane.b32.xlu1 %v688_v16, %s962_s24 }
0x1158   :  { %v309_v18 = vpop.permute.xlu0 %308 }
0x1159   :  { %v312_v19 = vsel %vm311_vm11, %v309_v18, 0.0 }
0x1181   :  { %313 = vadd.xlane.f32.xlu1 %v312_v19 }
0x1183   :  { %v383_v20 = vpop.xlane.xlu0 %382 }
0x1184   :  { %v384_v21 = vsub.f32 %v1056_v23, %v383_v20 }
0x1186   :  { %v385_v24 = vmul.f32 1.442695, %v384_v21 }
0x1188   :  { %834 = vpow2.f32 %v385_v24 }
0x118e   :  { %v835_v25 = vpop.eup %834 }
0x119a   :  { %388 = vrot.lane.b32.xlu1 %v835_v25, %s968_s6 }
0x11c1   :  { %v239_v26 = vpop.permute.xlu1 %238 }
0x11c2   :  { %241 = vst.msk [vmem:[#allocation8] sm:$0x2] %vm231_vm0, %v239_v26 }
0x11c4   :  { %462 = vmax.xlane.f32.xlu1 %v461_v27 }
0x11c9   :  { %v691_v28 = vpop.permute.xlu1 %690 }
0x11ca   :  { %v693_v23 = vadd.f32 %v691_v28, %v683_v31 }
0x11f4   :  { %v314_v29 = vpop.xlane.xlu1 %313 }
0x11f5   :  { %836 = vrcp.f32 %v314_v29 }
0x11f6   :  { %838 = vtanh.f32 %v693_v23 }
0x11fb   :  { %v837_v34 = vpop.eup %836 }
0x11fc   :  { %v316_v35 = vmul.f32 %v837_v34, %v827_v60  ;;  %v839_v33 = vpop.eup %838 }
0x11fe   :  { %318 = vrot.lane.b32.xlu2 %v316_v35, %s968_s6 }
0x1206   :  { %696 = vrot.lane.b32.xlu2 %v839_v33, %s969_s7 }
0x120c   :  { %v389_v36 = vpop.permute.xlu1 %388 }
0x120d   :  { %v392_v37 = vsel %vm391_vm13, %v389_v36, 0.0 }
0x122f   :  { %393 = vadd.xlane.f32.xlu2 %v392_v37 }
0x1237   :  { %622 = vmax.xlane.f32.xlu2 %v621_v32  ;;  %v463_v42 = vpop.xlane.xlu1 %462 }
0x1238   :  { %v464_v44 = vsub.f32 %v1068_v0, %v463_v42  ;;  %v541_v0 = vsel %vm540_vm1, %v1080_v43, -inf }
0x123a   :  { %v465_v45 = vmul.f32 1.442695, %v464_v44 }
0x123c   :  { %840 = vpow2.f32 %v465_v45 }
0x1242   :  { %v841_v46 = vpop.eup %840 }
0x1258   :  { %v319_v17 = vpop.permute.xlu2 %318 }
0x1259   :  { %321 = vst.msk [vmem:[#allocation8] sm:$0x4] %vm311_vm11, %v319_v17 }
0x1260   :  { %v697_v39 = vpop.permute.xlu2 %696 }
0x1261   :  { %v699_v40 = vmul.f32 %v697_v39, %v677_v15 }
0x1263   :  { %v701_v41 = vsel %vm700_vm15, %v699_v40, -inf }
0x1264   :  { %702 = vmax.xlane.f32.xlu2 %v701_v41 }
0x127c   :  { %468 = vrot.lane.b32.xlu2 %v841_v46, %s968_s6 }
0x12a2   :  { %v394_v47 = vpop.xlane.xlu2 %393 }
0x12a3   :  { %842 = vrcp.f32 %v394_v47 }
0x12a9   :  { %v843_v49 = vpop.eup %842 }
0x12aa   :  { %v623_v38 = vpop.xlane.xlu2 %622  ;;  %v396_v50 = vmul.f32 %v843_v49, %v835_v25 }
0x12ab   :  { %v624_v51 = vsub.f32 %v1097_v22, %v623_v38 }
0x12ac   :  { %398 = vrot.lane.b32.xlu0 %v396_v50, %s968_s6 }
0x12ad   :  { %v625_v52 = vmul.f32 1.442695, %v624_v51 }
0x12af   :  { %844 = vpow2.f32 %v625_v52 }
0x12b5   :  { %v845_v53 = vpop.eup %844 }
0x12b6   :  { %628 = vrot.lane.b32.xlu2 %v845_v53, %s968_s6 }
0x12d6   :  { %542 = vmax.xlane.f32.xlu0 %v541_v0 }
0x12d7   :  { %v703_v7 = vpop.xlane.xlu2 %702 }
0x12d8   :  { %v704_v54 = vsub.f32 %v699_v40, %v703_v7 }
0x12da   :  { %v705_v55 = vmul.f32 1.442695, %v704_v54 }
0x12dc   :  { %846 = vpow2.f32 %v705_v55 }
0x12df   :  { %v469_v56 = vpop.permute.xlu2 %468 }
0x12e0   :  { %v472_v57 = vsel %vm471_vm2, %v469_v56, 0.0 }
0x12e1   :  { %473 = vadd.xlane.f32.xlu1 %v472_v57 }
0x12e2   :  { %v847_v22 = vpop.eup %846 }
0x12e3   :  { %708 = vrot.lane.b32.xlu2 %v847_v22, %s968_s6 }
0x1310   :  { %v629_v2 = vpop.permute.xlu2 %628 }
0x1311   :  { %v632_v3 = vsel %vm631_vm3, %v629_v2, 0.0 }
0x131e   :  { %v399_v58 = vpop.permute.xlu0 %398 }
0x131f   :  { %401 = vst.msk [vmem:[#allocation8] sm:$0x8] %vm391_vm13, %v399_v58 }
0x133d   :  { %v709_v10 = vpop.permute.xlu2 %708 }
0x133e   :  { %v712_v15 = vsel %vm711_vm6, %v709_v10, 0.0 }
0x1349   :  { %v543_v8 = vpop.xlane.xlu0 %542 }
0x134a   :  { %v544_v59 = vsub.f32 %v1080_v43, %v543_v8 }
0x134c   :  { %v545_v60 = vmul.f32 1.442695, %v544_v59 }
0x134e   :  { %848 = vpow2.f32 %v545_v60 }
0x1354   :  { %v849_v61 = vpop.eup %848  ;;  %v474_v62 = vpop.xlane.xlu1 %473 }
0x1355   :  { %850 = vrcp.f32 %v474_v62  ;;  %548 = vrot.lane.b32.xlu0 %v849_v61, %s968_s6 }
0x135b   :  { %v851_v63 = vpop.eup %850 }
0x135c   :  { %v476_v1 = vmul.f32 %v851_v63, %v841_v46 }
0x135e   :  { %478 = vrot.lane.b32.xlu1 %v476_v1, %s968_s6 }
0x1388   :  { %633 = vadd.xlane.f32.xlu1 %v632_v3 }
0x13c7   :  { %v549_v4 = vpop.permute.xlu0 %548 }
0x13c8   :  { %v552_v43 = vsel %vm551_vm4, %v549_v4, 0.0 }
0x13c9   :  { %553 = vadd.xlane.f32.xlu2 %v552_v43 }
0x13d0   :  { %v479_v5 = vpop.permute.xlu1 %478 }
0x13d1   :  { %481 = vst.msk [vmem:[#allocation8] sm:$0x10] %vm471_vm2, %v479_v5 }
0x13fb   :  { %v634_v48 = vpop.xlane.xlu1 %633 }
0x13fc   :  { %852 = vrcp.f32 %v634_v48 }
0x1402   :  { %v853_v6 = vpop.eup %852 }
0x1403   :  { %v636_v9 = vmul.f32 %v853_v6, %v845_v53 }
0x1405   :  { %638 = vrot.lane.b32.xlu2 %v636_v9, %s968_s6 }
0x143c   :  { %v554_v11 = vpop.xlane.xlu2 %553 }
0x143d   :  { %854 = vrcp.f32 %v554_v11 }
0x1443   :  { %v855_v12 = vpop.eup %854 }
0x1444   :  { %v556_v13 = vmul.f32 %v855_v12, %v849_v61 }
0x1446   :  { %558 = vrot.lane.b32.xlu0 %v556_v13, %s968_s6 }
0x145f   :  { %v639_v14 = vpop.permute.xlu2 %638 }
0x1460   :  { %641 = vst.msk [vmem:[#allocation8] sm:$0x40] %vm631_vm3, %v639_v14 }
0x1470   :  { %713 = vadd.xlane.f32.xlu0 %v712_v15 }
0x14b8   :  { %v559_v16 = vpop.permute.xlu0 %558 }
0x14b9   :  { %561 = vst.msk [vmem:[#allocation8] sm:$0x20] %vm551_vm4, %v559_v16 }
0x14e3   :  { %v714_v18 = vpop.xlane.xlu0 %713 }
0x14e4   :  { %856 = vrcp.f32 %v714_v18 }
0x14ea   :  { %v857_v19 = vpop.eup %856 }
0x14eb   :  { %v716_v20 = vmul.f32 %v857_v19, %v847_v22 }
0x14ed   :  { %718 = vrot.lane.b32.xlu1 %v716_v20, %s968_s6 }
0x155f   :  { %v719_v21 = vpop.permute.xlu1 %718 }
0x1560   :  { %721 = vst.msk [vmem:[#allocation8] sm:$0x80] %vm711_vm6, %v719_v21 }
0x1561   :  { %732 = dma.vmem_to_hbm [thread:$0]  %s728_s9, 128, %s730_s12, [#allocation4]  }
0x1562   :  { %958 = dma.done.wait [#allocation4], 128  }
0x1563   :  { %959 = vsyncadd [#allocation4], 4294967168 }
0x1564   :  { %737 = vsyncpa [#allocation3], 1 }
0x1565   :  { %738 = vsyncpa [#allocation6], 1 }
0x1566   :  { %739 = vsyncpa [#allocation4], 1 }

</bundles_post_ra>
